<compile_context>
chip_gen: v7x
topology: tpu7x:2x2x1
jax: 0.10.0
libtpu: 0.0.40
codegen_flags: <defaults>
</compile_context>

<pallas_src>
import functools

import jax
import jax.numpy as jnp
from jax import lax
from jax.experimental import pallas as pl
from jax.experimental.pallas import tpu as pltpu

HIDDEN = 256
LN_EPS = 1e-5
OUT_PAD = 128            # lane-dense output width (>= action_dim, multiple of 128)
DEFAULT_TILE_B = 1024    # max batch tile (amortizes ~0.35us/step grid overhead)


def _round_up(n, m):
    return ((n + m - 1) // m) * m


def actor_kernel(max_action,
                 x_ref, w1_ref, b1_ref, g1_ref, be1_ref,
                 w2_ref, b2_ref, w3_ref, b3_ref, out_ref):
    x = x_ref[...]                                              # (TB, state_dim) f32

    # Layer 1: NoisyLinear(state_dim -> 256)  (bf16 operands, f32 accumulation)
    h = jnp.dot(x.astype(jnp.bfloat16), w1_ref[...],
                preferred_element_type=jnp.float32) + b1_ref[...]

    # LayerNorm(256) with affine (cannot be folded: ReLU sits between LN1 and LN2).
    # One-pass stats: var = E[h^2] - mean^2 (single sweep over the tile).
    mean = jnp.mean(h, axis=-1, keepdims=True)
    var = jnp.mean(h * h, axis=-1, keepdims=True) - mean * mean
    h = (h - mean) * lax.rsqrt(var + LN_EPS) * g1_ref[...] + be1_ref[...]
    h = jnp.maximum(h, 0.0)

    # LayerNorm(256): affine folded into w2/b2 at parameter-construction time,
    # so only the normalization itself runs here.
    mean = jnp.mean(h, axis=-1, keepdims=True)
    var = jnp.mean(h * h, axis=-1, keepdims=True) - mean * mean
    h = (h - mean) * lax.rsqrt(var + LN_EPS)

    # Layer 2: NoisyLinear(256 -> 256) + ReLU  (LN2 affine already baked in)
    h = jnp.dot(h.astype(jnp.bfloat16), w2_ref[...],
                preferred_element_type=jnp.float32) + b2_ref[...]
    h = jnp.maximum(h, 0.0)

    # Layer 3: NoisyLinear(256 -> OUT_PAD) + Tanh, scaled by max_action.
    # Columns >= action_dim have exactly-zero weights/bias -> tanh(0)*ma = 0.
    h = jnp.dot(h.astype(jnp.bfloat16), w3_ref[...],
                preferred_element_type=jnp.float32) + b3_ref[...]
    out_ref[...] = (max_action * jnp.tanh(h)).astype(out_ref.dtype)


def actor_forward(params, x, max_action, action_dim, tile_b_max=DEFAULT_TILE_B):
    B, state_dim = x.shape
    # >= 2 grid steps (even count) so megacore/"parallel" sharding is effective on
    # v7x; tile_b derived from the tile count so padding waste stays < 16 rows/tile
    # (16-row granularity keeps bf16 output blocks on native (16,128) tiling).
    n_tiles = max(2, 2 * pl.cdiv(B, 2 * tile_b_max))
    tile_b = _round_up(pl.cdiv(B, n_tiles), 16)
    B_pad = n_tiles * tile_b
    if B_pad != B:
        x = jnp.pad(x, ((0, B_pad - B), (0, 0)))

    kernel = functools.partial(actor_kernel, float(max_action))
    const = lambda i: (0, 0)                       # weights resident across grid

    flops = 2 * B_pad * (state_dim * HIDDEN + HIDDEN * HIDDEN + HIDDEN * OUT_PAD)
    transcendentals = B_pad * (2 + OUT_PAD)        # rsqrt rows + tanh lanes per row
    bytes_accessed = int(
        B_pad * state_dim * 4 + B_pad * OUT_PAD * 2
        + sum(int(v.size) * v.dtype.itemsize for v in params.values()))

    out = pl.pallas_call(
        kernel,
        out_shape=jax.ShapeDtypeStruct((B_pad, OUT_PAD), jnp.bfloat16),
        grid=(n_tiles,),
        in_specs=[
            pl.BlockSpec((tile_b, state_dim), lambda i: (i, 0)),   # x: batch-tiled
            pl.BlockSpec((state_dim, HIDDEN), const),              # w1
            pl.BlockSpec((1, HIDDEN), const),                      # b1
            pl.BlockSpec((1, HIDDEN), const),                      # ln1 gamma
            pl.BlockSpec((1, HIDDEN), const),                      # ln1 beta
            pl.BlockSpec((HIDDEN, HIDDEN), const),                 # w2 (LN2 folded)
            pl.BlockSpec((1, HIDDEN), const),                      # b2 (LN2 folded)
            pl.BlockSpec((HIDDEN, OUT_PAD), const),                # w3 (padded)
            pl.BlockSpec((1, OUT_PAD), const),                     # b3 (padded)
        ],
        out_specs=pl.BlockSpec((tile_b, OUT_PAD), lambda i: (i, 0)),
        compiler_params=pltpu.CompilerParams(
            dimension_semantics=("parallel",)),                    # megacore on v7x
        cost_estimate=pl.CostEstimate(
            flops=flops, transcendentals=transcendentals,
            bytes_accessed=bytes_accessed),
    )(x,
      params["w1"], params["b1"],
      params["ln1_g"], params["ln1_b"],
      params["w2"], params["b2"],
      params["w3"], params["b3"])
    return out[:B, :action_dim].astype(jnp.float32)


# ------------------------- parameter construction -------------------------
def _noisy_linear_effective(key, in_f, out_f):
    """Effective training-mode weight/bias of NoisyLinear (gaussian noise)."""
    k_mu_w, k_mu_b, k_eps_w, k_eps_b = jax.random.split(key, 4)
    # xavier_normal_(gain=0.1)
    std = 0.1 * jnp.sqrt(2.0 / (in_f + out_f))
    w_mu = std * jax.random.normal(k_mu_w, (out_f, in_f), jnp.float32)
    b_mu = jax.random.uniform(k_mu_b, (out_f,), jnp.float32, -0.01, 0.01)
    sigma = 0.1 / in_f                              # (std_init/sqrt(in)) / sqrt(in)
    w_eps = jnp.clip(jax.random.normal(k_eps_w, (out_f, in_f), jnp.float32), -1.0, 1.0)
    b_eps = jnp.clip(jax.random.normal(k_eps_b, (out_f,), jnp.float32), -1.0, 1.0)
    w_eff = w_mu + sigma * w_eps                    # (out, in)
    b_eff = b_mu + sigma * b_eps                    # (out,)
    # pre-transpose weight to (in, out); bias to (1, out) for lane-dense use
    return w_eff.T, b_eff.reshape(1, out_f)


def make_actor_params(key, state_dim, action_dim):
    """Returns (kernel_params, raw_params). raw_params is the unfolded f32 form
    used by the pure-JAX reference; kernel_params has LN2 folded into layer 2,
    bf16 matmul weights and a zero-padded 128-wide output layer."""
    k1, k2, k3 = jax.random.split(key, 3)
    w1, b1 = _noisy_linear_effective(k1, state_dim, HIDDEN)
    w2, b2 = _noisy_linear_effective(k2, HIDDEN, HIDDEN)
    w3, b3 = _noisy_linear_effective(k3, HIDDEN, action_dim)

    # PyTorch nn.LayerNorm default init: gamma = 1, beta = 0.
    ln1_g = jnp.ones((1, HIDDEN), jnp.float32)
    ln1_b = jnp.zeros((1, HIDDEN), jnp.float32)
    ln2_g = jnp.ones((1, HIDDEN), jnp.float32)
    ln2_b = jnp.zeros((1, HIDDEN), jnp.float32)

    raw = {
        "w1": w1, "b1": b1, "ln1_g": ln1_g, "ln1_b": ln1_b,
        "ln2_g": ln2_g, "ln2_b": ln2_b, "w2": w2, "b2": b2,
        "w3": w3, "b3": b3,
    }

    # Fold LN2's affine into layer 2 (f32 math before the bf16 cast):
    #   (norm * g2 + be2) @ w2 + b2 == norm @ (diag(g2) @ w2) + (be2 @ w2 + b2)
    w2_folded = w2 * ln2_g.reshape(HIDDEN, 1)       # scale rows (input features)
    b2_folded = ln2_b @ w2 + b2

    # Zero-pad output layer to OUT_PAD lanes (lane-dense store in-kernel).
    w3_pad = jnp.pad(w3, ((0, 0), (0, OUT_PAD - action_dim)))
    b3_pad = jnp.pad(b3, ((0, 0), (0, OUT_PAD - action_dim)))

    kernel_params = {
        "w1": w1.astype(jnp.bfloat16), "b1": b1,
        "ln1_g": ln1_g, "ln1_b": ln1_b,
        "w2": w2_folded.astype(jnp.bfloat16), "b2": b2_folded,
        "w3": w3_pad.astype(jnp.bfloat16), "b3": b3_pad,
    }
    return kernel_params, raw


# ------------------------------- reference --------------------------------
def actor_forward_ref(raw, x, max_action, action_dim):
    """Pure-JAX reference using the UNFOLDED parameters, standard two-pass
    LayerNorm variance and explicit LN2 affine (validates the in-kernel fold
    and the one-pass LN stats). Activations/weights are bf16-rounded before
    each dot to mirror the kernel's MXU numerics."""
    def mm(h, w, b):
        return (jnp.dot(h.astype(jnp.bfloat16).astype(jnp.float32),
                        w.astype(jnp.bfloat16).astype(jnp.float32)) + b)

    def ln(h, g, b):
        m = h.mean(-1, keepdims=True)
        v = ((h - m) ** 2).mean(-1, keepdims=True)
        return (h - m) * jax.lax.rsqrt(v + LN_EPS) * g + b

    h = mm(x, raw["w1"], raw["b1"])
    h = ln(h, raw["ln1_g"], raw["ln1_b"])
    h = jnp.maximum(h, 0.0)
    h = ln(h, raw["ln2_g"], raw["ln2_b"])
    h = jnp.maximum(mm(h, raw["w2"], raw["b2"]), 0.0)
    h = mm(h, raw["w3"], raw["b3"])
    out = max_action * jnp.tanh(h)
    # mirror the kernel's bf16 output store
    return out.astype(jnp.bfloat16).astype(jnp.float32)[:, :action_dim]


if __name__ == "__main__":
    batch, state_dim, action_dim = 2, 8, 4
    max_action = 1.0

    key = jax.random.PRNGKey(0)
    k_params, k_x = jax.random.split(key)
    params, raw = make_actor_params(k_params, state_dim, action_dim)
    x = jax.random.normal(k_x, (batch, state_dim), jnp.float32)

    out = actor_forward(params, x, max_action, action_dim)
    out = jax.block_until_ready(out)

    ref = actor_forward_ref(raw, x, max_action, action_dim)
    assert out.shape == (batch, action_dim)
    # bf16 matmul operands / bf16 output store => ~1e-2 tolerance vs f32 PyTorch.
    assert jnp.allclose(out, ref, atol=1e-2, rtol=1e-2), (
        jnp.max(jnp.abs(out - ref)))

    print("KERNEL_OK")
</pallas_src>

<mosaic_0001>
module attributes {stable_mosaic.version = 11 : i64} {
  func.func @actor_kernel(%arg0: i32, %arg1: memref<16x8xf32, #tpu.memory_space<vmem>>, %arg2: memref<8x256xbf16, #tpu.memory_space<vmem>>, %arg3: memref<1x256xf32, #tpu.memory_space<vmem>>, %arg4: memref<1x256xf32, #tpu.memory_space<vmem>>, %arg5: memref<1x256xf32, #tpu.memory_space<vmem>>, %arg6: memref<256x256xbf16, #tpu.memory_space<vmem>>, %arg7: memref<1x256xf32, #tpu.memory_space<vmem>>, %arg8: memref<256x128xbf16, #tpu.memory_space<vmem>>, %arg9: memref<1x128xf32, #tpu.memory_space<vmem>>, %arg10: memref<16x128xbf16, #tpu.memory_space<vmem>>) attributes {dimension_semantics = [#tpu.dimension_semantics<parallel>], iteration_bounds = array<i64: 2>, scalar_prefetch = 0 : i64, scratch_operands = 0 : i64, tpu.core_type = #tpu.core_type<tc>, window_params = [{transform_indices = @transform_0, window_bounds = array<i64: 16, 8>}, {pipeline_mode = #tpu.pipeline_mode<synchronous>, transform_indices = @transform_1, window_bounds = array<i64: 8, 256>}, {pipeline_mode = #tpu.pipeline_mode<synchronous>, transform_indices = @transform_2, window_bounds = array<i64: 1, 256>}, {pipeline_mode = #tpu.pipeline_mode<synchronous>, transform_indices = @transform_3, window_bounds = array<i64: 1, 256>}, {pipeline_mode = #tpu.pipeline_mode<synchronous>, transform_indices = @transform_4, window_bounds = array<i64: 1, 256>}, {pipeline_mode = #tpu.pipeline_mode<synchronous>, transform_indices = @transform_5, window_bounds = array<i64: 256, 256>}, {pipeline_mode = #tpu.pipeline_mode<synchronous>, transform_indices = @transform_6, window_bounds = array<i64: 1, 256>}, {pipeline_mode = #tpu.pipeline_mode<synchronous>, transform_indices = @transform_7, window_bounds = array<i64: 256, 128>}, {pipeline_mode = #tpu.pipeline_mode<synchronous>, transform_indices = @transform_8, window_bounds = array<i64: 1, 128>}, {transform_indices = @transform_9, window_bounds = array<i64: 16, 128>}]} {
    %c0 = arith.constant 0 : index
    %c0_0 = arith.constant 0 : index
    %0 = vector.load %arg1[%c0, %c0_0] : memref<16x8xf32, #tpu.memory_space<vmem>>, vector<16x8xf32>
    %1 = arith.truncf %0 : vector<16x8xf32> to vector<16x8xbf16>
    %c0_1 = arith.constant 0 : index
    %c0_2 = arith.constant 0 : index
    %2 = vector.load %arg2[%c0_1, %c0_2] : memref<8x256xbf16, #tpu.memory_space<vmem>>, vector<8x256xbf16>
    %cst = arith.constant dense<0.000000e+00> : vector<16x256xf32>
    %3 = tpu.matmul %1, %2, %cst {dimension_numbers = #tpu.dot_dimension_numbers<[1], [0], [0], [1], [0, 0, 1, 1], [], []>} : vector<16x8xbf16>, vector<8x256xbf16>, vector<16x256xf32> -> vector<16x256xf32>
    %c0_3 = arith.constant 0 : index
    %c0_4 = arith.constant 0 : index
    %4 = vector.load %arg3[%c0_3, %c0_4] : memref<1x256xf32, #tpu.memory_space<vmem>>, vector<1x256xf32>
    %5 = vector.broadcast %4 : vector<1x256xf32> to vector<16x256xf32>
    %6 = arith.addf %3, %5 : vector<16x256xf32>
    %cst_5 = arith.constant dense<0.000000e+00> : vector<16xf32>
    %7 = vector.multi_reduction <add>, %6, %cst_5 [1] : vector<16x256xf32> to vector<16xf32>
    %8 = vector.shape_cast %7 : vector<16xf32> to vector<16x1xf32>
    %cst_6 = arith.constant 2.560000e+02 : f32
    %9 = vector.broadcast %cst_6 : f32 to vector<16x1xf32>
    %10 = arith.divf %8, %9 : vector<16x1xf32>
    %11 = arith.mulf %6, %6 : vector<16x256xf32>
    %cst_7 = arith.constant dense<0.000000e+00> : vector<16xf32>
    %12 = vector.multi_reduction <add>, %11, %cst_7 [1] : vector<16x256xf32> to vector<16xf32>
    %13 = vector.shape_cast %12 : vector<16xf32> to vector<16x1xf32>
    %cst_8 = arith.constant 2.560000e+02 : f32
    %14 = vector.broadcast %cst_8 : f32 to vector<16x1xf32>
    %15 = arith.divf %13, %14 : vector<16x1xf32>
    %16 = arith.mulf %10, %10 : vector<16x1xf32>
    %17 = arith.subf %15, %16 : vector<16x1xf32>
    %18 = vector.broadcast %10 : vector<16x1xf32> to vector<16x256xf32>
    %19 = arith.subf %6, %18 : vector<16x256xf32>
    %cst_9 = arith.constant 9.99999974E-6 : f32
    %20 = vector.broadcast %cst_9 : f32 to vector<16x1xf32>
    %21 = arith.addf %17, %20 : vector<16x1xf32>
    %22 = math.rsqrt %21 : vector<16x1xf32>
    %23 = vector.broadcast %22 : vector<16x1xf32> to vector<16x256xf32>
    %24 = arith.mulf %19, %23 : vector<16x256xf32>
    %c0_10 = arith.constant 0 : index
    %c0_11 = arith.constant 0 : index
    %25 = vector.load %arg4[%c0_10, %c0_11] : memref<1x256xf32, #tpu.memory_space<vmem>>, vector<1x256xf32>
    %26 = vector.broadcast %25 : vector<1x256xf32> to vector<16x256xf32>
    %27 = arith.mulf %24, %26 : vector<16x256xf32>
    %c0_12 = arith.constant 0 : index
    %c0_13 = arith.constant 0 : index
    %28 = vector.load %arg5[%c0_12, %c0_13] : memref<1x256xf32, #tpu.memory_space<vmem>>, vector<1x256xf32>
    %29 = vector.broadcast %28 : vector<1x256xf32> to vector<16x256xf32>
    %30 = arith.addf %27, %29 : vector<16x256xf32>
    %cst_14 = arith.constant 0.000000e+00 : f32
    %31 = vector.broadcast %cst_14 : f32 to vector<16x256xf32>
    %32 = arith.maximumf %30, %31 : vector<16x256xf32>
    %cst_15 = arith.constant dense<0.000000e+00> : vector<16xf32>
    %33 = vector.multi_reduction <add>, %32, %cst_15 [1] : vector<16x256xf32> to vector<16xf32>
    %34 = vector.shape_cast %33 : vector<16xf32> to vector<16x1xf32>
    %cst_16 = arith.constant 2.560000e+02 : f32
    %35 = vector.broadcast %cst_16 : f32 to vector<16x1xf32>
    %36 = arith.divf %34, %35 : vector<16x1xf32>
    %37 = arith.mulf %32, %32 : vector<16x256xf32>
    %cst_17 = arith.constant dense<0.000000e+00> : vector<16xf32>
    %38 = vector.multi_reduction <add>, %37, %cst_17 [1] : vector<16x256xf32> to vector<16xf32>
    %39 = vector.shape_cast %38 : vector<16xf32> to vector<16x1xf32>
    %cst_18 = arith.constant 2.560000e+02 : f32
    %40 = vector.broadcast %cst_18 : f32 to vector<16x1xf32>
    %41 = arith.divf %39, %40 : vector<16x1xf32>
    %42 = arith.mulf %36, %36 : vector<16x1xf32>
    %43 = arith.subf %41, %42 : vector<16x1xf32>
    %44 = vector.broadcast %36 : vector<16x1xf32> to vector<16x256xf32>
    %45 = arith.subf %32, %44 : vector<16x256xf32>
    %cst_19 = arith.constant 9.99999974E-6 : f32
    %46 = vector.broadcast %cst_19 : f32 to vector<16x1xf32>
    %47 = arith.addf %43, %46 : vector<16x1xf32>
    %48 = math.rsqrt %47 : vector<16x1xf32>
    %49 = vector.broadcast %48 : vector<16x1xf32> to vector<16x256xf32>
    %50 = arith.mulf %45, %49 : vector<16x256xf32>
    %51 = arith.truncf %50 : vector<16x256xf32> to vector<16x256xbf16>
    %c0_20 = arith.constant 0 : index
    %c0_21 = arith.constant 0 : index
    %52 = vector.load %arg6[%c0_20, %c0_21] : memref<256x256xbf16, #tpu.memory_space<vmem>>, vector<256x256xbf16>
    %cst_22 = arith.constant dense<0.000000e+00> : vector<16x256xf32>
    %53 = tpu.matmul %51, %52, %cst_22 {dimension_numbers = #tpu.dot_dimension_numbers<[1], [0], [0], [1], [0, 0, 1, 1], [], []>} : vector<16x256xbf16>, vector<256x256xbf16>, vector<16x256xf32> -> vector<16x256xf32>
    %c0_23 = arith.constant 0 : index
    %c0_24 = arith.constant 0 : index
    %54 = vector.load %arg7[%c0_23, %c0_24] : memref<1x256xf32, #tpu.memory_space<vmem>>, vector<1x256xf32>
    %55 = vector.broadcast %54 : vector<1x256xf32> to vector<16x256xf32>
    %56 = arith.addf %53, %55 : vector<16x256xf32>
    %cst_25 = arith.constant 0.000000e+00 : f32
    %57 = vector.broadcast %cst_25 : f32 to vector<16x256xf32>
    %58 = arith.maximumf %56, %57 : vector<16x256xf32>
    %59 = arith.truncf %58 : vector<16x256xf32> to vector<16x256xbf16>
    %c0_26 = arith.constant 0 : index
    %c0_27 = arith.constant 0 : index
    %60 = vector.load %arg8[%c0_26, %c0_27] : memref<256x128xbf16, #tpu.memory_space<vmem>>, vector<256x128xbf16>
    %cst_28 = arith.constant dense<0.000000e+00> : vector<16x128xf32>
    %61 = tpu.matmul %59, %60, %cst_28 {dimension_numbers = #tpu.dot_dimension_numbers<[1], [0], [0], [1], [0, 0, 1, 1], [], []>} : vector<16x256xbf16>, vector<256x128xbf16>, vector<16x128xf32> -> vector<16x128xf32>
    %c0_29 = arith.constant 0 : index
    %c0_30 = arith.constant 0 : index
    %62 = vector.load %arg9[%c0_29, %c0_30] : memref<1x128xf32, #tpu.memory_space<vmem>>, vector<1x128xf32>
    %63 = vector.broadcast %62 : vector<1x128xf32> to vector<16x128xf32>
    %64 = arith.addf %61, %63 : vector<16x128xf32>
    %65 = math.tanh %64 : vector<16x128xf32>
    %cst_31 = arith.constant 1.000000e+00 : f32
    %66 = vector.broadcast %cst_31 : f32 to vector<16x128xf32>
    %67 = arith.mulf %66, %65 : vector<16x128xf32>
    %68 = arith.truncf %67 : vector<16x128xf32> to vector<16x128xbf16>
    %c0_32 = arith.constant 0 : index
    %c0_33 = arith.constant 0 : index
    %69 = vector.load %arg10[%c0_32, %c0_33] : memref<16x128xbf16, #tpu.memory_space<vmem>>, vector<16x128xbf16>
    tpu.vector_store %arg10[%c0_32, %c0_33], %68 {strides = array<i32>} : memref<16x128xbf16, #tpu.memory_space<vmem>>, vector<16x128xbf16>,
    return
  }
  func.func @transform_0(%arg0: i32) -> (i32, i32) {
    %c0_i32 = arith.constant 0 : i32
    %c0_i32_0 = arith.constant 0 : i32
    return %arg0, %c0_i32 : i32, i32
  }
  func.func @transform_1(%arg0: i32) -> (i32, i32) {
    %c0_i32 = arith.constant 0 : i32
    %c0_i32_0 = arith.constant 0 : i32
    %c0_i32_1 = arith.constant 0 : i32
    return %c0_i32, %c0_i32_0 : i32, i32
  }
  func.func @transform_2(%arg0: i32) -> (i32, i32) {
    %c0_i32 = arith.constant 0 : i32
    %c0_i32_0 = arith.constant 0 : i32
    %c0_i32_1 = arith.constant 0 : i32
    return %c0_i32, %c0_i32_0 : i32, i32
  }
  func.func @transform_3(%arg0: i32) -> (i32, i32) {
    %c0_i32 = arith.constant 0 : i32
    %c0_i32_0 = arith.constant 0 : i32
    %c0_i32_1 = arith.constant 0 : i32
    return %c0_i32, %c0_i32_0 : i32, i32
  }
  func.func @transform_4(%arg0: i32) -> (i32, i32) {
    %c0_i32 = arith.constant 0 : i32
    %c0_i32_0 = arith.constant 0 : i32
    %c0_i32_1 = arith.constant 0 : i32
    return %c0_i32, %c0_i32_0 : i32, i32
  }
  func.func @transform_5(%arg0: i32) -> (i32, i32) {
    %c0_i32 = arith.constant 0 : i32
    %c0_i32_0 = arith.constant 0 : i32
    %c0_i32_1 = arith.constant 0 : i32
    return %c0_i32, %c0_i32_0 : i32, i32
  }
  func.func @transform_6(%arg0: i32) -> (i32, i32) {
    %c0_i32 = arith.constant 0 : i32
    %c0_i32_0 = arith.constant 0 : i32
    %c0_i32_1 = arith.constant 0 : i32
    return %c0_i32, %c0_i32_0 : i32, i32
  }
  func.func @transform_7(%arg0: i32) -> (i32, i32) {
    %c0_i32 = arith.constant 0 : i32
    %c0_i32_0 = arith.constant 0 : i32
    %c0_i32_1 = arith.constant 0 : i32
    return %c0_i32, %c0_i32_0 : i32, i32
  }
  func.func @transform_8(%arg0: i32) -> (i32, i32) {
    %c0_i32 = arith.constant 0 : i32
    %c0_i32_0 = arith.constant 0 : i32
    %c0_i32_1 = arith.constant 0 : i32
    return %c0_i32, %c0_i32_0 : i32, i32
  }
  func.func @transform_9(%arg0: i32) -> (i32, i32) {
    %c0_i32 = arith.constant 0 : i32
    %c0_i32_0 = arith.constant 0 : i32
    return %arg0, %c0_i32 : i32, i32
  }
}

</mosaic_0001>

<bundles_post_ra>
// kernel: tpu_custom_call.1
= control target key start
LH: loop header
LB: loop body
LE: loop exit
PB: predicated region body
PF: predicated region fallthrough
CT: control target
= control target key end

     0   :  { %14 = vsyncpa [#allocation3], 0  ;;  %s1776_s0 = inlined_call_operand.vmem [shape: f32[32,8], index: 0, kind: input, shape index: {}]   ;;  %s1777_s1 = inlined_call_operand.vmem [shape: bf16[8,256], index: 1, kind: input, shape index: {}]   ;;  %s1778_s2 = inlined_call_operand.vmem [shape: f32[1,256], index: 2, kind: input, shape index: {}]   ;;  %s1779_s3 = inlined_call_operand.vmem [shape: f32[1,256], index: 3, kind: input, shape index: {}]   ;;  %s1780_s4 = inlined_call_operand.vmem [shape: f32[1,256], index: 4, kind: input, shape index: {}]   ;;  %s1781_s5 = inlined_call_operand.hbm [shape: bf16[256,256], index: 5, kind: input, shape index: {}]   ;;  %s1782_s6 = inlined_call_operand.vmem [shape: f32[1,256], index: 6, kind: input, shape index: {}]   ;;  %s1783_s7 = inlined_call_operand.hbm [shape: bf16[256,128], index: 7, kind: input, shape index: {}]   ;;  %s1784_s8 = inlined_call_operand.vmem [shape: f32[1,128], index: 8, kind: input, shape index: {}]   ;;  %s1785_s9 = inlined_call_operand.hbm [shape: bf16[32,128], index: 9, kind: output, shape index: {}]  }
   0x1   :  { %15 = vsyncpa [#allocation6], 0 }
   0x2   :  { %16 = vsyncpa [#allocation4], 0 }
   0x3   :  { %18 = vsyncpa [#allocation4 + $0x1], 0  ;;  %s1524_s30 = smov 0   ;;  %s1526_s10 = smov 0  }
   0x4   :  { %s1528_s11 = smov 0   ;;  %s1530_s12 = smov 0  }
   0x5 LB: > { %1792 = sst [smem:[#allocation11_spill]] %s1458_s11  ;;  %s1545_s13 = sadd.s32 4294967295, %s1462_s12   ;;  %s1462_s12 = sphi %s1530_s12, %s1806_s12   ;;  %s1458_s11 = sphi %s1528_s11, %s1808_s11   ;;  %s1454_s10 = sphi %s1526_s10, %s1810_s10   ;;  %s1450_s30 = sphi %s1524_s30, %s1809_s30  }
   0x6   : > { %s1090_s14 = sadd.s32 4294967294, %s1462_s12   ;;  %s1549_s15 = sadd.s32 1, %s1462_s12  }
   0x7   : > { %1793 = sst [smem:[#allocation12_spill]] %s1549_s15  ;;  %s225_s16 = sadd.s32 1, %s1458_s11 }
   0x8   : > { %s222_s17 = ssub.s32 %s1462_s12, %s1549_s15  ;;  %p235_p0 = scmp.ne.s32.totalorder %s1458_s11, %s1454_s10 }
   0x9   : > { %p223_p1 = scmp.eq.s32.totalorder %s222_s17, 0  ;;  %p236_p2 = scmp.eq.s32.totalorder %s1545_s13, 1 }
   0xa   : > { %p241_p3 = scmp.ne.s32.totalorder %s1454_s10, %s1450_s30  ;;  %p242_p4 = scmp.eq.s32.totalorder %s1090_s14, 1 }
   0xb   : > { %s1560_s18 = scalar_select %p223_p1, %s1458_s11, %s225_s16  }
   0xc   : > { %p1562_p5 = por %p236_p2, %p235_p0  ;;  %p1566_p6 = por %p242_p4, %p241_p3 }
   0xd   : > { %1794 = sst [smem:[#allocation13_spill]] %s1560_s18  ;;  %p1091_p7 = scmp.ge.s32.totalorder %s1462_s12, 1 }
   0xe   : > { %s1795_s19 = scalar_select %p1562_p5, 1, 0 }
   0xf   : > { %s1796_s20 = scalar_select %p1566_p6, 1, 0 }
  0x10   : > { %p249_p8 = scmp.lt.s32.totalorder %s1462_s12, 3  ;;  %p1786_p9 = scmp.eq.s32.totalorder %s1545_s13, 0 }
  0x11   : > { %s1464_s22 = smov [#allocation2]   ;;  %s1465_s25 = smov [#allocation5]  }
  0x12   : > { %p1573_p10 = pnand %p1091_p7, %p249_p8  ;;  %s273_s23 = sshll.u32 %s1464_s22, 4  ;;  %s274_s23 = int_to_ptr.vmem [resolvable:$true] %s273_s23 }
  0x13   : > { %s289_s26 = sshll.u32 %s1465_s25, 4  ;;  %s1336_s29 = scalar_lea.hbm %s1781_s5, 4096  ;;  %s1585_s26 = int_to_ptr.vmem [resolvable:$true] %s289_s26 }
  0x14   : > { %s1797_s21 = scalar_select %p1573_p10, 1, 0 }
  0x15   : > { %p1201_p11 = pneg %p1573_p10  ;;  %p1337_p13 = scmp.ne.s32.totalorder %s1781_s5, %s1336_s29 }
  0x16   : > { %p1343_p3 = scmp.lt.u32.totalorder %s1336_s29, %s1781_s5 }
  0x17   : > { %p1581_p12 = pnand %p1786_p9, %p1201_p11 }
  0x19   : > { %p1338_p0 = pneg %p1581_p12 }
  0x1b   : > { %p1339_p1 = pnand %p1338_p0, %p1337_p13 }
  0x1d   : > { %p1340_p2 = pneg %p1339_p1 }
  0x1f   : > { %p1345_p4 = pnand %p1343_p3, %p1340_p2 }
  0x21   : > { %1348 = shalt.err (!%p1345_p4)
}
  0x22   : > { %s1349_s25 = scalar_lea.vmem %s274_s23, 4096  ;;  %p1357_p9 = scmp.lt.s32.totalorder %s274_s23, %s274_s23 }
  0x23   : > { %p1350_p7 = scmp.ne.s32.totalorder %s274_s23, %s1349_s25  ;;  %p1358_p6 = scmp.lt.s32.totalorder %s1349_s25, %s1349_s25 }
  0x25   : > { %p1352_p8 = pnand %p1350_p7, %p1338_p0  ;;  %p1359_p5 = por %p1358_p6, %p1357_p9 }
  0x27   : > { %p1353_p11 = pneg %p1352_p8 }
  0x29   : > { %p1360_p10 = pnand %p1359_p5, %p1353_p11 }
  0x2b   : > { %1363 = shalt.err (!%p1360_p10)
}
  0x2c   : > { %s1466_s27 = smov 128   ;;  %s1467_s28 = smov 8  }
  0x2d   : > { %1204 = dma.hbm_to_vmem [thread:$0]  (!%p1581_p12), %s1781_s5, 4096, %s274_s23, [#allocation3], %s1466_s27, %s1466_s27, %s1467_s28  }
  0x2e   : > { %s1364_s22 = scalar_lea.hbm %s1783_s7, 2048 }
  0x2f   : > { %p1365_p13 = scmp.ne.s32.totalorder %s1783_s7, %s1364_s22  ;;  %p1371_p9 = scmp.lt.u32.totalorder %s1364_s22, %s1783_s7 }
  0x31   : > { %p1367_p5 = pnand %p1365_p13, %p1338_p0 }
  0x33   : > { %p1368_p6 = pneg %p1367_p5 }
  0x35   : > { %p1373_p10 = pnand %p1371_p9, %p1368_p6 }
  0x37   : > { %1376 = shalt.err (!%p1373_p10)
}
  0x38   : > { %s1377_s23 = scalar_lea.vmem %s1585_s26, 2048  ;;  %p1385_p4 = scmp.lt.s32.totalorder %s1585_s26, %s1585_s26 }
  0x39   : > { %p1378_p1 = scmp.ne.s32.totalorder %s1585_s26, %s1377_s23  ;;  %p1386_p7 = scmp.lt.s32.totalorder %s1377_s23, %s1377_s23 }
  0x3b   : > { %p1380_p2 = pnand %p1378_p1, %p1338_p0  ;;  %p1387_p8 = por %p1386_p7, %p1385_p4 }
  0x3d   : > { %p1381_p3 = pneg %p1380_p2 }
  0x3f   : > { %p1388_p11 = pnand %p1387_p8, %p1381_p3 }
  0x41   : > { %1391 = shalt.err (!%p1388_p11)
}
  0x42   : > { %s1468_s11 = smov 64   ;;  %s1469_s15 = smov 4  }
  0x43   : > { %1207 = dma.hbm_to_vmem [thread:$0]  (!%p1581_p12), %s1783_s7, 2048, %s1585_s26, [#allocation6], %s1468_s11, %s1468_s11, %s1469_s15  }
  0x44   : > { %p1799_p13 = scmp.ne.s32.totalorder %s1797_s21, 0 }
  0x45   : > { %p1800_p0 = scmp.eq.s32.totalorder (!%p1799_p13), %s1545_s13, 0 }
  0x46   : > { %317 = sbr.rel (%p1799_p13) target bundleno = 1120 (0x460), region = 56 }
  0x4d   : > { %1437 = dma.done.wait (%p1800_p0), [#allocation3], 4096   ;;  %p1801_p5 = pmov %p1800_p0 }
  0x4e   : > { %p1802_p6 = pmov %p1800_p0 }
  0x4f   : > { %1439 = vsyncadd (%p1801_p5), [#allocation3], 4294963200 }
  0x50   : > { %1441 = dma.done.wait (%p1802_p6), [#allocation6], 2048   ;;  %p1803_p9 = pmov %p1800_p0 }
  0x51   : > { %s1099_s24 = sshll.u32 %s1545_s13, 1  ;;  %v1470_v0 = vmov 0   ;;  %v368_v1 = vld [vmem:[%s1777_s1] sm:$0xff]  ;;  %vm390_vm0 = vcmask 1043456   ;;  %vm386_vm1 = vcmask 64512   ;;  %v371_v8 = vlaneseq  ;;  %s354_s26 = sand.u32 1, %s1454_s10  }
  0x52   : > { %1443 = vsyncadd (%p1803_p9), [#allocation6], 4294965248  ;;  %429 = vmatprep.mubr.bf16.mxu0 %v1470_v0  ;;  %p358_p12 = scmp.lt.s32.totalorder %s1099_s24, 3  ;;  %v1102_v4 = vcombine.high %v368_v1, %v368_v1  ;;  %v1101_v5 = vcombine.low %v368_v1, %v368_v1  ;;  %v369_v11 = vld [vmem:[%s1778_s2] sm:$0x3]  ;;  %s1098_s28 = sshll.u32 %s354_s26, 3 }
  0x53   : > { %v372_v9 = vshrl.u32 %v371_v8, 7  ;;  %v1260_v31 = vld [vmem:[#allocation2 + $0x4] ss:$8 sps:$4 sm:$0xff]   ;;  %v1262_v32 = vld [vmem:[#allocation2] ss:$8 sps:$4 sm:$0xff]   ;;  %s356_s14 = scalar_lea.vmem [#allocation7], %s1098_s28 }
  0x54   : > { %s1812_s24 = smov (!%p358_p12, %s1099_s24), 3  ;;  %1103 = vmatprep.subr.msk.bf16.mxu0 %vm390_vm0, %v1102_v4  ;;  %v392_v6 = vsel %vm390_vm0, %v1101_v5, 0  ;;  %v1263_v33 = vld [vmem:[#allocation2 + $0x14] ss:$8 sps:$4 sm:$0xff]   ;;  %755 = vmatprep.subr.bf16.mxu1 %v1260_v31  ;;  %v1265_v34 = vld [vmem:[#allocation2 + $0x10] ss:$8 sps:$4 sm:$0xff]  }
  0x55   : > { %s1100_s21 = sshll.u32 %s1812_s24, 3  ;;  %398 = vmatpush1.bf16.msra.mxu0 %v392_v6  ;;  %v1651_v10 = vsub.s32 0, %v372_v9  ;;  %v1656_v12 = vsub.s32 1, %v372_v9  ;;  %756 = vmatpush1.bf16.msra.mxu1 %v1262_v32  ;;  %v1266_v35 = vld [vmem:[#allocation2 + $0x24] ss:$8 sps:$4 sm:$0xff]   ;;  %s1006_s16 = sshll.u32 %s356_s14, 4  ;;  %s1733_s16 = int_to_ptr.vmem [resolvable:$true] %s1006_s16 }
  0x56   : > { %s361_s29 = scalar_lea.vmem %s1776_s0, %s1100_s21  ;;  %757 = vmatprep.subr.bf16.mxu1 %v1263_v33  ;;  %v1268_v36 = vld [vmem:[#allocation2 + $0x20] ss:$8 sps:$4 sm:$0xff]   ;;  %v1269_v37 = vld [vmem:[#allocation2 + $0x34] ss:$8 sps:$4 sm:$0xff]   ;;  %v1271_v38 = vld [vmem:[#allocation2 + $0x30] ss:$8 sps:$4 sm:$0xff]  }
  0x57   : > { %v365_v2 = vld [vmem:[%s361_s29] sm:$0xff]  ;;  %v366_v3 = vld [vmem:[%s361_s29 + $0x8] sm:$0xff]  ;;  %v374_v13 = vrot.slane %v369_v11, %v1651_v10  ;;  %v378_v14 = vrot.slane %v369_v11, %v1656_v12  ;;  %s1163_s29 = sshll.u32 %s1545_s13, 7  ;;  %s1735_s23 = scalar_lea.sflag [#allocation4], %s354_s26 }
  0x58   : > { %v367_v7 = vpack.c.bf16 %v366_v3, %v365_v2  ;;  %v1272_v39 = vld [vmem:[#allocation2 + $0x44] ss:$8 sps:$4 sm:$0xff]   ;;  %v1274_v40 = vld [vmem:[#allocation2 + $0x40] ss:$8 sps:$4 sm:$0xff]   ;;  %v1275_v41 = vld [vmem:[#allocation2 + $0x54] ss:$8 sps:$4 sm:$0xff]   ;;  %s1731_s25 = scalar_lea.hbm %s1785_s9, %s1163_s29 }
  0x59   : > { %758 = vmatpush1.bf16.msra.mxu1 %v1265_v34  ;;  %v1277_v42 = vld [vmem:[#allocation2 + $0x50] ss:$8 sps:$4 sm:$0xff]   ;;  %v1278_v43 = vld [vmem:[#allocation2 + $0x64] ss:$8 sps:$4 sm:$0xff]   ;;  %v1280_v44 = vld [vmem:[#allocation2 + $0x60] ss:$8 sps:$4 sm:$0xff]  }
  0x5a   : > { %1104 = vmatmul.mubr.msk.bf16.vlgmr.msra.gmra.mrb[0].mxu0 %vm386_vm1, %v367_v7  ;;  %759 = vmatprep.subr.bf16.mxu1 %v1266_v35  ;;  %v1281_v45 = vld [vmem:[#allocation2 + $0x74] ss:$8 sps:$4 sm:$0xff]   ;;  %v1283_v46 = vld [vmem:[#allocation2 + $0x70] ss:$8 sps:$4 sm:$0xff]   ;;  %v1284_v47 = vld [vmem:[#allocation2 + $0x84] ss:$8 sps:$4 sm:$0xff]  }
  0x5b   : > { %v1286_v48 = vld [vmem:[#allocation2 + $0x80] ss:$8 sps:$4 sm:$0xff]   ;;  %v477_v63 = vld [vmem:[%s1779_s3] sm:$0x3]  ;;  %s1392_s11 = scalar_lea.vmem %s1733_s16, 128  ;;  %p1804_p1 = scmp.ne.s32.totalorder %s1795_s19, 0 }
  0x5c   : > { %v493_v0 = vld [vmem:[%s1780_s4] sm:$0x3]  ;;  %v482_v3 = vrot.slane %v477_v63, %v1651_v10  ;;  %v486_v4 = vrot.slane %v477_v63, %v1656_v12  ;;  %p1393_p10 = scmp.ne.s32.totalorder %s1733_s16, %s1392_s11  ;;  %s1471_s13 = smov [#allocation7]  }
  0x5d   : > { %760 = vmatpush1.bf16.msra.mxu1 %v1268_v36  ;;  %v498_v8 = vrot.slane %v493_v0, %v1651_v10  ;;  %v502_v9 = vrot.slane %v493_v0, %v1656_v12  ;;  %s1396_s15 = sshll.u32 %s1471_s13, 4  ;;  %s1397_s15 = int_to_ptr.vmem [resolvable:$false] %s1396_s15 }
  0x5e   : > { %761 = vmatprep.subr.bf16.mxu1 %v1269_v37  ;;  %v1287_v37 = vld [vmem:[#allocation2 + $0x94] ss:$8 sps:$4 sm:$0xff]   ;;  %p1394_p2 = pnand %p1393_p10, %p1804_p1  ;;  %s1398_s18 = scalar_lea.vmem %s1397_s15, 256 }
  0x5f   : > { %p1399_p4 = scmp.lt.s32.totalorder %s1733_s16, %s1397_s15  ;;  %p1400_p7 = scmp.lt.s32.totalorder %s1398_s18, %s1392_s11 }
  0x60   : > { %p1395_p3 = pneg %p1394_p2 }
  0x61   : > { %762 = vmatpush1.bf16.msra.mxu1 %v1271_v38  ;;  %v1289_v38 = vld [vmem:[#allocation2 + $0x90] ss:$8 sps:$4 sm:$0xff]   ;;  %p1401_p8 = por %p1400_p7, %p1399_p4 }
  0x62   : > { %763 = vmatprep.subr.bf16.mxu1 %v1272_v39  ;;  %v1290_v39 = vld [vmem:[#allocation2 + $0xa4] ss:$8 sps:$4 sm:$0xff]  }
  0x63   : > { %p1402_p11 = pnand %p1401_p8, %p1395_p3 }
  0x65   : > { %764 = vmatpush1.bf16.msra.mxu1 %v1274_v40  ;;  %v1292_v40 = vld [vmem:[#allocation2 + $0xa0] ss:$8 sps:$4 sm:$0xff]  }
  0x66   : > { %765 = vmatprep.subr.bf16.mxu1 %v1275_v41  ;;  %v1293_v41 = vld [vmem:[#allocation2 + $0xb4] ss:$8 sps:$4 sm:$0xff]  }
  0x69   : > { %766 = vmatpush1.bf16.msra.mxu1 %v1277_v42  ;;  %v1295_v42 = vld [vmem:[#allocation2 + $0xb0] ss:$8 sps:$4 sm:$0xff]  }
  0x6a   : > { %767 = vmatprep.subr.bf16.mxu1 %v1278_v43  ;;  %v1296_v43 = vld [vmem:[#allocation2 + $0xc4] ss:$8 sps:$4 sm:$0xff]  }
  0x6d   : > { %768 = vmatpush1.bf16.msra.mxu1 %v1280_v44  ;;  %v1298_v44 = vld [vmem:[#allocation2 + $0xc0] ss:$8 sps:$4 sm:$0xff]  }
  0x6e   : > { %769 = vmatprep.subr.bf16.mxu1 %v1281_v45  ;;  %v1299_v45 = vld [vmem:[#allocation2 + $0xd4] ss:$8 sps:$4 sm:$0xff]  }
  0x71   : > { %770 = vmatpush1.bf16.msra.mxu1 %v1283_v46  ;;  %v1301_v46 = vld [vmem:[#allocation2 + $0xd0] ss:$8 sps:$4 sm:$0xff]  }
  0x72   : > { %771 = vmatprep.subr.bf16.mxu1 %v1284_v47  ;;  %v1302_v47 = vld [vmem:[#allocation2 + $0xe4] ss:$8 sps:$4 sm:$0xff]  }
  0x75   : > { %772 = vmatpush1.bf16.msra.mxu1 %v1286_v48  ;;  %v1304_v48 = vld [vmem:[#allocation2 + $0xe0] ss:$8 sps:$4 sm:$0xff]  }
  0x76   : > { %773 = vmatprep.subr.bf16.mxu1 %v1287_v37 }
  0x79   : > { %774 = vmatpush1.bf16.msra.mxu1 %v1289_v38 }
  0x7a   : > { %775 = vmatprep.subr.bf16.mxu1 %v1290_v39 }
  0x7d   : > { %776 = vmatpush1.bf16.msra.mxu1 %v1292_v40 }
  0x7e   : > { %777 = vmatprep.subr.bf16.mxu1 %v1293_v41 }
  0x81   : > { %778 = vmatpush1.bf16.msra.mxu1 %v1295_v42 }
  0x82   : > { %779 = vmatprep.subr.bf16.mxu1 %v1296_v43 }
  0x85   : > { %780 = vmatpush1.bf16.msra.mxu1 %v1298_v44 }
  0x86   : > { %781 = vmatprep.subr.bf16.mxu1 %v1299_v45 }
  0x89   : > { %782 = vmatpush1.bf16.msra.mxu1 %v1301_v46 }
  0x8a   : > { %783 = vmatprep.subr.bf16.mxu1 %v1302_v47 }
  0x8d   : > { %784 = vmatpush1.bf16.msra.mxu1 %v1304_v48 }
 0x12d   : > { %v431_v15 = vpop.f32.mrb[0].mxu0 }
 0x12e   : > { %v1660_v16 = vadd.f32 %v431_v15, %v374_v13  ;;  %v433_v17 = vpop.f32.mrb[1].mxu0 }
 0x12f   : > { %v1662_v18 = vadd.f32 %v433_v17, %v378_v14  ;;  %v435_v19 = vpop.f32.mrb[2].mxu0 }
 0x130   : > { %v1664_v20 = vadd.f32 %v435_v19, %v374_v13  ;;  %v437_v21 = vpop.f32.mrb[3].mxu0  ;;  %v449_v22 = vmul.f32 %v1660_v16, %v1660_v16 }
 0x131   : > { %v1668_v23 = vadd.f32 %v437_v21, %v378_v14  ;;  %v440_v24 = vadd.f32 %v1662_v18, %v1660_v16  ;;  %v450_v25 = vmul.f32 %v1662_v18, %v1662_v18 }
 0x132   : > { %v451_v27 = vmul.f32 %v1664_v20, %v1664_v20 }
 0x133   : > { %441 = vadd.xlane.f32.xlu0 %v440_v24  ;;  %v453_v26 = vadd.f32 %v450_v25, %v449_v22  ;;  %v452_v28 = vmul.f32 %v1668_v23, %v1668_v23  ;;  %v443_v29 = vadd.f32 %v1668_v23, %v1664_v20 }
 0x135   : > { %454 = vadd.xlane.f32.xlu1 %v453_v26  ;;  %v456_v30 = vadd.f32 %v452_v28, %v451_v27 }
 0x137   : > { %444 = vadd.xlane.f32.xlu0 %v443_v29 }
 0x139   : > { %457 = vadd.xlane.f32.xlu1 %v456_v30 }
 0x1c0   : > { %v442_v49 = vpop.xlane.xlu0 %441 }
 0x1c1   : > { %v447_v50 = vmul.f32 0.00390625, %v442_v49  ;;  %v1305_v49 = vld [vmem:[#allocation2 + $0xf4] ss:$8 sps:$4 sm:$0xff]  }
 0x1c2   : > { %v455_v51 = vpop.xlane.xlu1 %454  ;;  %785 = vmatprep.subr.bf16.mxu1 %v1305_v49 }
 0x1c3   : > { %v459_v52 = vmul.f32 0.00390625, %v455_v51  ;;  %v461_v53 = vmul.f32 %v447_v50, %v447_v50  ;;  %v465_v1 = vsub.f32 %v1660_v16, %v447_v50  ;;  %v466_v2 = vsub.f32 %v1662_v18, %v447_v50  ;;  %v1307_v50 = vld [vmem:[#allocation2 + $0xf0] ss:$8 sps:$4 sm:$0xff]   ;;  %v1308_v51 = vld [vmem:[#allocation5 + $0x40] sm:$0xff]  }
 0x1c4   : > { %v445_v54 = vpop.xlane.xlu0 %444  ;;  %786 = vmatpush1.bf16.msra.mxu1 %v1307_v50  ;;  %1169 = vmatprep.subr.bf16.mxu0 %v1308_v51 }
 0x1c5   : > { %v463_v55 = vsub.f32 %v459_v52, %v461_v53  ;;  %v448_v56 = vmul.f32 0.00390625, %v445_v54  ;;  %v1309_v52 = vld [vmem:[#allocation5] sm:$0xff]   ;;  %v1310_v53 = vld [vmem:[#allocation5 + $0x48] sm:$0xff]  }
 0x1c6   : > { %v458_v57 = vpop.xlane.xlu1 %457  ;;  %1170 = vmatpush3.bf16.msra.mxu0 %v1309_v52  ;;  %v1311_v54 = vld [vmem:[#allocation5 + $0x8] sm:$0xff]  }
 0x1c7   : > { %v469_v58 = vadd.f32 1e-05, %v463_v55  ;;  %v460_v59 = vmul.f32 0.00390625, %v458_v57  ;;  %v462_v60 = vmul.f32 %v448_v56, %v448_v56  ;;  %v467_v14 = vsub.f32 %v1664_v20, %v448_v56  ;;  %1171 = vmatprep.subr.bf16.mxu0 %v1310_v53  ;;  %v1312_v55 = vld [vmem:[#allocation5 + $0x50] sm:$0xff]   ;;  %v1314_v57 = vld [vmem:[#allocation5 + $0x58] sm:$0xff]  }
 0x1c8   : > { %v468_v15 = vsub.f32 %v1668_v23, %v448_v56  ;;  %v1313_v56 = vld [vmem:[#allocation5 + $0x10] sm:$0xff]  }
 0x1c9   : > { %1324 = vrsqrt.f32 %v469_v58  ;;  %v464_v61 = vsub.f32 %v460_v59, %v462_v60  ;;  %v1315_v58 = vld [vmem:[#allocation5 + $0x18] sm:$0xff]   ;;  %v1316_v59 = vld [vmem:[#allocation5 + $0x60] sm:$0xff]  }
 0x1ca   : > { %1172 = vmatpush3.bf16.msra.mxu0 %v1311_v54  ;;  %v1317_v60 = vld [vmem:[#allocation5 + $0x20] sm:$0xff]  }
 0x1cb   : > { %v470_v62 = vadd.f32 1e-05, %v464_v61  ;;  %1173 = vmatprep.subr.bf16.mxu0 %v1312_v55  ;;  %v1318_v61 = vld [vmem:[#allocation5 + $0x68] sm:$0xff]  }
 0x1cd   : > { %1326 = vrsqrt.f32 %v470_v62 }
 0x1ce   : > { %1174 = vmatpush3.bf16.msra.mxu0 %v1313_v56 }
 0x1cf   : > { %1175 = vmatprep.subr.bf16.mxu0 %v1314_v57 }
 0x1d2   : > { %1176 = vmatpush3.bf16.msra.mxu0 %v1315_v58 }
 0x1d3   : > { %v1325_v5 = vpop.eup %1324  ;;  %1177 = vmatprep.subr.bf16.mxu0 %v1316_v59 }
 0x1d4   : > { %v473_v6 = vmul.f32 %v1325_v5, %v465_v1  ;;  %v474_v7 = vmul.f32 %v1325_v5, %v466_v2 }
 0x1d6   : > { %v489_v11 = vmul.f32 %v482_v3, %v473_v6  ;;  %v490_v13 = vmul.f32 %v486_v4, %v474_v7  ;;  %1178 = vmatpush3.bf16.msra.mxu0 %v1317_v60 }
 0x1d7   : > { %v1327_v16 = vpop.eup %1326  ;;  %1179 = vmatprep.subr.bf16.mxu0 %v1318_v61 }
 0x1d8   : > { %v505_v17 = vadd.f32 %v498_v8, %v489_v11  ;;  %v506_v18 = vadd.f32 %v502_v9, %v490_v13  ;;  %v475_v19 = vmul.f32 %v1327_v16, %v467_v14  ;;  %v476_v21 = vmul.f32 %v1327_v16, %v468_v15 }
 0x1da   : > { %v1694_v22 = vmax.f32 %v505_v17, 0.0  ;;  %v1696_v24 = vmax.f32 %v506_v18, 0.0  ;;  %v491_v25 = vmul.f32 %v482_v3, %v475_v19  ;;  %v492_v26 = vmul.f32 %v486_v4, %v476_v21 }
 0x1dc   : > { %v513_v27 = vadd.f32 %v1696_v24, %v1694_v22  ;;  %v521_v28 = vmul.f32 %v1694_v22, %v1694_v22  ;;  %v522_v20 = vmul.f32 %v1696_v24, %v1696_v24  ;;  %v507_v23 = vadd.f32 %v498_v8, %v491_v25 }
 0x1dd   : > { %v508_v29 = vadd.f32 %v502_v9, %v492_v26 }
 0x1de   : > { %514 = vadd.xlane.f32.xlu0 %v513_v27  ;;  %v1704_v30 = vmax.f32 %v507_v23, 0.0  ;;  %v525_v32 = vadd.f32 %v522_v20, %v521_v28  ;;  %v1319_v23 = vld [vmem:[#allocation5 + $0x28] sm:$0xff]  }
 0x1df   : > { %v1706_v31 = vmax.f32 %v508_v29, 0.0  ;;  %1180 = vmatpush3.bf16.msra.mxu0 %v1319_v23  ;;  %v1320_v29 = vld [vmem:[#allocation5 + $0x70] sm:$0xff]  }
 0x1e0   : > { %v523_v34 = vmul.f32 %v1704_v30, %v1704_v30  ;;  %1181 = vmatprep.subr.bf16.mxu0 %v1320_v29 }
 0x1e1   : > { %v516_v33 = vadd.f32 %v1706_v31, %v1704_v30  ;;  %v524_v35 = vmul.f32 %v1706_v31, %v1706_v31 }
 0x1e2   : > { %526 = vadd.xlane.f32.xlu0 %v525_v32  ;;  %v1321_v32 = vld [vmem:[#allocation5 + $0x30] sm:$0xff]  }
 0x1e3   : > { %517 = vadd.xlane.f32.xlu1 %v516_v33  ;;  %v528_v36 = vadd.f32 %v524_v35, %v523_v34  ;;  %1182 = vmatpush3.bf16.msra.mxu0 %v1321_v32 }
 0x1e7   : > { %529 = vadd.xlane.f32.xlu1 %v528_v36 }
 0x26b   : > { %v515_v62 = vpop.xlane.xlu0 %514 }
 0x26c   : > { %v519_v63 = vmul.f32 0.00390625, %v515_v62 }
 0x26e   : > { %v533_v2 = vmul.f32 %v519_v63, %v519_v63  ;;  %v537_v15 = vsub.f32 %v1694_v22, %v519_v63  ;;  %v538_v17 = vsub.f32 %v1696_v24, %v519_v63  ;;  %v1322_v22 = vld [vmem:[#allocation5 + $0x78] sm:$0xff]  }
 0x26f   : > { %v527_v0 = vpop.xlane.xlu0 %526  ;;  %1183 = vmatprep.subr.bf16.mxu0 %v1322_v22  ;;  %v583_v24 = vld [vmem:[%s1782_s6] sm:$0x3] }
 0x270   : > { %v518_v1 = vpop.xlane.xlu1 %517  ;;  %v531_v3 = vmul.f32 0.00390625, %v527_v0  ;;  %v592_v33 = vrot.slane %v583_v24, %v1656_v12  ;;  %v1137_v12 = vld [vmem:[%s1784_s8] ss:$0 sm:$0xff] }
 0x271   : > { %v520_v4 = vmul.f32 0.00390625, %v518_v1 }
 0x272   : > { %v535_v5 = vsub.f32 %v531_v3, %v533_v2 }
 0x273   : > { %v534_v8 = vmul.f32 %v520_v4, %v520_v4  ;;  %v539_v16 = vsub.f32 %v1704_v30, %v520_v4  ;;  %v540_v18 = vsub.f32 %v1706_v31, %v520_v4  ;;  %v1323_v30 = vld [vmem:[#allocation5 + $0x38] sm:$0xff]   ;;  %v588_v31 = vrot.slane %v583_v24, %v1651_v10 }
 0x274   : > { %v530_v6 = vpop.xlane.xlu1 %529  ;;  %v541_v7 = vadd.f32 1e-05, %v535_v5  ;;  %1184 = vmatpush3.bf16.msra.mxu0 %v1323_v30 }
 0x275   : > { %v532_v9 = vmul.f32 0.00390625, %v530_v6 }
 0x276   : > { %1328 = vrsqrt.f32 %v541_v7 }
 0x277   : > { %v536_v11 = vsub.f32 %v532_v9, %v534_v8 }
 0x279   : > { %v542_v13 = vadd.f32 1e-05, %v536_v11 }
 0x27b   : > { %1330 = vrsqrt.f32 %v542_v13 }
 0x280   : > { %v1329_v14 = vpop.eup %1328 }
 0x281   : > { %v546_v21 = vmul.f32 %v1329_v14, %v538_v17  ;;  %v545_v26 = vmul.f32 %v1329_v14, %v537_v15 }
 0x285   : > { %v1331_v19 = vpop.eup %1330 }
 0x286   : > { %v548_v25 = vmul.f32 %v1331_v19, %v540_v18  ;;  %v547_v27 = vmul.f32 %v1331_v19, %v539_v16 }
 0x288   : > { %v550_v28 = vpack.c.bf16 %v548_v25, %v546_v21  ;;  %v549_v20 = vpack.c.bf16 %v547_v27, %v545_v26 }
 0x28a   : > { %787 = vmatprep.mubr.bf16.mxu1 %v550_v28 }
 0x28b   : > { %788 = vmatmul.mubr.bf16.vlgmr.msra.gmra.mrb[0].mxu1 %v549_v20 }
 0x35e   : > { %v789_v34 = vpop.f32.mrb[0].mxu1 }
 0x35f   : > { %v790_v35 = vadd.f32 %v789_v34, %v588_v31  ;;  %v791_v36 = vpop.f32.mrb[1].mxu1 }
 0x360   : > { %v792_v37 = vadd.f32 %v791_v36, %v592_v33  ;;  %v793_v38 = vpop.f32.mrb[2].mxu1 }
 0x361   : > { %v794_v39 = vadd.f32 %v793_v38, %v588_v31  ;;  %v795_v40 = vpop.f32.mrb[3].mxu1  ;;  %v798_v42 = vmax.f32 %v790_v35, 0.0 }
 0x362   : > { %v796_v41 = vadd.f32 %v795_v40, %v592_v33  ;;  %v799_v44 = vmax.f32 %v792_v37, 0.0 }
 0x363   : > { %v800_v43 = vmax.f32 %v794_v39, 0.0 }
 0x364   : > { %v801_v45 = vmax.f32 %v796_v41, 0.0 }
 0x365   : > { %v802_v46 = vpack.c.bf16 %v800_v43, %v798_v42 }
 0x366   : > { %v803_v47 = vpack.c.bf16 %v801_v45, %v799_v44 }
 0x368   : > { %971 = vmatprep.mubr.bf16.mxu0 %v803_v47 }
 0x369   : > { %972 = vmatmul.mubr.bf16.vlgmr.msra.gmra.mrb[4].mxu0 %v802_v46 }
 0x43c   : > { %v1185_v10 = vpop.f32.mrb[4].mxu0 }
 0x43d   : > { %v1186_v48 = vpop.f32.mrb[5].mxu0 }
 0x43e   : > { %v1187_v49 = vadd.f32 %v1186_v48, %v1185_v10  ;;  %v1188_v50 = vpop.f32.mrb[6].mxu0 }
 0x43f   : > { %v1189_v51 = vpop.f32.mrb[7].mxu0 }
 0x440   : > { %v974_v52 = vadd.f32 %v1187_v49, %v1137_v12  ;;  %v1190_v53 = vadd.f32 %v1189_v51, %v1188_v50 }
 0x442   : > { %v977_v54 = vadd.f32 %v1190_v53, %v1137_v12  ;;  %1332 = vtanh.f32 %v974_v52 }
 0x444   : > { %1334 = vtanh.f32 %v977_v54 }
 0x44c   : > { %v1333_v55 = vpop.eup %1332 }
 0x44e   : > { %v1335_v56 = vpop.eup %1334 }
 0x44f   : > { %v1167_v57 = vpack.c.bf16 %v1335_v56, %v1333_v55 }
 0x451   : > { %1168 = vst [vmem:[%s356_s14] sm:$0xff] %v1167_v57  }
 0x452   : > { %1405 = shalt.err (!%p1402_p11)
}
 0x453   : > { %s1406_s27 = scalar_lea.hbm %s1731_s25, 128  ;;  %s1410_s26 = scalar_lea.hbm %s1785_s9, 256 }
 0x454   : > { %p1407_p13 = scmp.ne.s32.totalorder %s1731_s25, %s1406_s27  ;;  %p1411_p6 = scmp.lt.u32.totalorder %s1731_s25, %s1785_s9 }
 0x455   : > { %p1412_p9 = scmp.lt.u32.totalorder %s1410_s26, %s1406_s27  ;;  %p1414_p10 = scmp.lt.u32.totalorder %s1406_s27, %s1731_s25 }
 0x456   : > { %p1408_p0 = pnand %p1407_p13, %p1804_p1 }
 0x457   : > { %p1413_p12 = por %p1412_p9, %p1411_p6 }
 0x458   : > { %p1409_p5 = pneg %p1408_p0 }
 0x459   : > { %p1415_p2 = por %p1414_p10, %p1413_p12 }
 0x45b   : > { %p1416_p3 = pnand %p1415_p2, %p1409_p5 }
 0x45d   : > { %1419 = shalt.err (!%p1416_p3)
}
 0x45e   : > { %s1472_s14 = smov 64   ;;  %s1473_s17 = smov 4  }
 0x45f   : > { %1199 = dma.vmem_to_hbm [thread:$0]  (%p1804_p1), %s1733_s16, 128, %s1731_s25, %s1735_s23, %s1472_s14, %s1472_s14, %s1473_s17  }
 0x460 PF: > { %p1216_p4 = scmp.ge.s32.totalorder %s1462_s12, 2  ;;  %s1021_s22 = sand.u32 1, %s1450_s30  }
 0x461   : > { %p1805_p7 = scmp.ne.s32.totalorder %s1796_s20, 0  ;;  %s1022_s11 = scalar_lea.sflag [#allocation4], %s1021_s22 }
 0x463   : > { %p1209_p8 = pnand %p1216_p4, %p1805_p7 }
 0x465   : > { %1445 = dma.done.wait (!%p1209_p8), %s1022_s11, 128  }
 0x466   : > { %1447 = vsyncadd (!%p1209_p8), %s1022_s11, 4294967168  ;;  %s1806_s12 = sld [smem:[#allocation12_spill]]  ;;  %s1807_s13 = sld [smem:[#allocation11_spill]] }
 0x467   : > { %s1808_s11 = sld [smem:[#allocation13_spill]]  ;;  %s1809_s30 = smov %s1454_s10 }
 0x46c   : > { %p21_p11 = scmp.ge.s32.totalorder %s1806_s12, 4   ;;  %s1810_s10 = smov %s1807_s13 }
 0x46e   :  { %23 = sbr.rel (!%p21_p11) target bundleno = 5 (0x5), region = 100 }
 0x475   :  { %1027 = vsyncpa [#allocation3], 1 }
 0x476   :  { %1029 = vsyncpa [#allocation3 + $0x1], 1 }
 0x477   :  { %1030 = vsyncpa [#allocation6], 1 }
 0x478   :  { %1031 = vsyncpa [#allocation4], 1 }
 0x479   :  { %1033 = vsyncpa [#allocation4 + $0x1], 1 }

</bundles_post_ra>
